<compile_context>
chip_gen: v6e
topology: v6e:2x2x1
jax: 0.10.0
libtpu: 0.0.40
codegen_flags: <defaults>
</compile_context>

<pallas_src>
import functools

import jax
import jax.numpy as jnp
from jax.experimental import pallas as pl
from jax.experimental.pallas import tpu as pltpu

EPS = 1e-5
LANE = 128   # vreg lane width
SUB = 8      # vreg sublane width
N_LAYERS = 3


def _round_up(v, m):
    return -(-v // m) * m


def _pad2(a, rows, cols):
    return jnp.zeros((rows, cols), jnp.float32).at[:a.shape[0], :a.shape[1]].set(a)


# ---------------------------------------------------------------------------
# Fused kernel: grid = (layer, row-tile).  Scratch (h, xl, BN stats) persists
# across grid steps; adjacency row tiles are streamed per step.
# ---------------------------------------------------------------------------
def gnn_kernel(adj_ref, sea_ref, x_ref, pool_ref,
               wn_ref, bn_ref, we_ref, gamma_ref, beta_ref,
               fcw_ref, fcb_ref,
               out_ref,
               h_scr, xl_scr, sum_scr, ssq_scr,
               *, tm, inv_nodes):
    layer = pl.program_id(0)
    rt = pl.program_id(1)
    n_rt = pl.num_programs(1)

    # ---- layer prologue (first row tile of each layer) -----------------------
    @pl.when(rt == 0)
    def _():
        @pl.when(layer == 0)
        def _():
            h_scr[...] = x_ref[...]
        # node linear transform for ALL rows, once per layer (bf16 MXU, f32 acc)
        xl = jnp.dot(h_scr[...].astype(jnp.bfloat16), wn_ref[0],
                     preferred_element_type=jnp.float32) + bn_ref[0]
        xl_scr[...] = xl.astype(jnp.bfloat16)
        sum_scr[...] = jnp.zeros_like(sum_scr)
        ssq_scr[...] = jnp.zeros_like(ssq_scr)

    # ---- aggregation for this row tile ---------------------------------------
    # self-loop folded into adj_hat; edge term collapsed to sea_aug @ [We; be]
    agg = (jnp.dot(adj_ref[...], xl_scr[...], preferred_element_type=jnp.float32)
           + jnp.dot(sea_ref[...], we_ref[0], preferred_element_type=jnp.float32))

    start = pl.multiple_of(rt * tm, tm)
    h_scr[pl.ds(start, tm), :] = agg          # h is dead once xl is computed -> reuse

    # single-pass BN statistics (padded node rows of agg are exactly zero)
    sum_scr[...] += jnp.sum(agg, axis=0, keepdims=True)
    ssq_scr[...] += jnp.sum(agg * agg, axis=0, keepdims=True)

    # ---- layer epilogue (last row tile): fused BN scale/shift + ReLU ---------
    @pl.when(rt == n_rt - 1)
    def _():
        mean = sum_scr[...] * inv_nodes
        var = jnp.maximum(ssq_scr[...] * inv_nodes - mean * mean, 0.0)
        scale = gamma_ref[0] * jax.lax.rsqrt(var + EPS)      # rsqrt -> EUP slot
        shift = beta_ref[0] - mean * scale
        h_scr[...] = jnp.maximum(h_scr[...] * scale + shift, 0.0)

        # final head after the last conv layer: mean-pool + Linear
        @pl.when(layer == N_LAYERS - 1)
        def _():
            pooled = jnp.dot(pool_ref[...], h_scr[...].astype(jnp.bfloat16),
                             preferred_element_type=jnp.float32)
            out_ref[...] = (jnp.dot(pooled.astype(jnp.bfloat16), fcw_ref[...],
                                    preferred_element_type=jnp.float32)
                            + fcb_ref[...])


def gnn_forward(prep, num_graphs, output_dim):
    (adj, sea_aug, x_pad, pool_pad,
     wn_s, bn_s, we_s, ga_s, be_s, fc_w, fc_b,
     tm, n_pad, g_pad, num_nodes) = prep

    n_rt = n_pad // tm
    grid = (N_LAYERS, n_rt)

    kernel = functools.partial(gnn_kernel, tm=tm,
                               inv_nodes=1.0 / float(num_nodes))

    def wslice(shape):   # per-layer weight slice, resident for the whole layer
        return pl.BlockSpec(shape, lambda l, r: (l, 0, 0))

    in_specs = [
        pl.BlockSpec((tm, n_pad), lambda l, r: (r, 0)),    # adj_hat row tile (bf16)
        pl.BlockSpec((tm, LANE), lambda l, r: (r, 0)),     # sea_aug row tile (bf16)
        pl.BlockSpec((n_pad, LANE), lambda l, r: (0, 0)),  # x (resident, f32)
        pl.BlockSpec((g_pad, n_pad), lambda l, r: (0, 0)),  # pool (resident, bf16)
        wslice((1, LANE, LANE)),                           # Wn       (bf16)
        wslice((1, 1, LANE)),                              # bn       (f32)
        wslice((1, LANE, LANE)),                           # [We; be] (bf16)
        wslice((1, 1, LANE)),                              # gamma    (f32)
        wslice((1, 1, LANE)),                              # beta     (f32)
        pl.BlockSpec((LANE, LANE), lambda l, r: (0, 0)),   # fc_w (bf16)
        pl.BlockSpec((1, LANE), lambda l, r: (0, 0)),      # fc_b (f32)
    ]
    out_spec = pl.BlockSpec((g_pad, LANE), lambda l, r: (0, 0))

    scratch_shapes = [
        pltpu.VMEM((n_pad, LANE), jnp.float32),    # h / agg (full graph, resident)
        pltpu.VMEM((n_pad, LANE), jnp.bfloat16),   # xl (MXU operand)
        pltpu.VMEM((1, LANE), jnp.float32),        # BN sum
        pltpu.VMEM((1, LANE), jnp.float32),        # BN sum of squares
    ]

    # VMEM budget: double-buffered streamed tiles + resident arrays + scratch + headroom.
    est = (2 * tm * n_pad * 2 + 2 * tm * LANE * 2
           + n_pad * LANE * 4 + g_pad * n_pad * 2
           + 2 * (2 * LANE * LANE * 2 + 3 * LANE * 4)
           + LANE * LANE * 2 + LANE * 4
           + n_pad * LANE * (4 + 2) + 2 * LANE * 4
           + 2 * g_pad * LANE * 4)
    vmem_limit = int(min(64 << 20, max(32 << 20, 2 * est)))

    flops = (N_LAYERS * (2 * n_pad * LANE * LANE
                         + 2 * n_pad * n_pad * LANE
                         + 2 * n_pad * LANE * LANE)
             + 2 * g_pad * n_pad * LANE + 2 * g_pad * LANE * LANE)
    bytes_accessed = (N_LAYERS * (n_pad * n_pad + n_pad * LANE) * 2
                      + n_pad * LANE * 4 + g_pad * n_pad * 2
                      + N_LAYERS * (2 * LANE * LANE * 2 + 3 * LANE * 4)
                      + LANE * LANE * 2 + LANE * 4 + g_pad * LANE * 4)

    out = pl.pallas_call(
        kernel,
        out_shape=jax.ShapeDtypeStruct((g_pad, LANE), jnp.float32),
        grid_spec=pltpu.PrefetchScalarGridSpec(
            num_scalar_prefetch=0,
            grid=grid,
            in_specs=in_specs,
            out_specs=out_spec,
            scratch_shapes=scratch_shapes),
        compiler_params=pltpu.CompilerParams(
            # both axes carry scratch state (layer chaining, BN accumulators)
            dimension_semantics=("arbitrary", "arbitrary"),
            vmem_limit_bytes=vmem_limit),
        cost_estimate=pl.CostEstimate(flops=flops,
                                      transcendentals=N_LAYERS * LANE,
                                      bytes_accessed=bytes_accessed),
    )(adj, sea_aug, x_pad, pool_pad, wn_s, bn_s, we_s, ga_s, be_s, fc_w, fc_b)
    return out[:num_graphs, :output_dim]


# ---------------------------------------------------------------------------
# Host-side preparation (layer-invariant graph precompute + lane padding + bf16)
# ---------------------------------------------------------------------------
def prepare_inputs(x, edge_attr, edge_index, batch, num_nodes, num_graphs, params,
                   tm=None):
    if tm is None:
        # small graphs: tiny tile so the multi-tile path is exercised; large: 256.
        tm = 8 if num_nodes <= 128 else 256
    n_pad = _round_up(max(num_nodes, tm), tm)
    g_pad = _round_up(max(num_graphs, SUB), SUB)

    src, dst = edge_index[0], edge_index[1]

    # adjacency with self-loops folded in (only for real nodes); padded rows/cols zero
    adj_hat = (jnp.zeros((n_pad, n_pad), jnp.float32)
               .at[dst, src].add(1.0)
               .at[jnp.arange(num_nodes), jnp.arange(num_nodes)].add(1.0))

    # layer-invariant edge aggregation: sea = scat @ edge_attr, deg = in-degree
    sea = jnp.zeros((n_pad, edge_attr.shape[1]), jnp.float32).at[dst].add(edge_attr)
    deg = jnp.zeros((n_pad, 1), jnp.float32).at[dst].add(1.0)
    sea_aug = _pad2(jnp.concatenate([sea, deg], axis=1), n_pad, LANE)

    # mean-pool matrix (guarded divide -> no NaN for empty/padded graph ids)
    onehot = (batch[None, :] == jnp.arange(num_graphs)[:, None]).astype(jnp.float32)
    cnt = onehot.sum(axis=1, keepdims=True)
    pool = onehot / jnp.where(cnt > 0, cnt, 1.0)
    pool_pad = _pad2(pool, g_pad, n_pad)

    x_pad = _pad2(x, n_pad, LANE)

    wn, bn, wea, gam, bet = [], [], [], [], []
    for i in range(N_LAYERS):
        p = params[f"conv{i + 1}"]
        wn.append(_pad2(p["wn"], LANE, LANE))
        bn.append(_pad2(p["bn"], 1, LANE))
        # [We ; be] so the edge term + its bias become one matmul against sea_aug
        wea.append(_pad2(jnp.concatenate([p["we"], p["be"]], axis=0), LANE, LANE))
        gam.append(_pad2(p["gamma"], 1, LANE))
        bet.append(_pad2(p["beta"], 1, LANE))
    fc_w = _pad2(params["fc"]["w"], LANE, LANE)
    fc_b = _pad2(params["fc"]["b"], 1, LANE)

    bf16 = jnp.bfloat16
    return (adj_hat.astype(bf16),
            sea_aug.astype(bf16),
            x_pad,
            pool_pad.astype(bf16),
            jnp.stack(wn).astype(bf16),
            jnp.stack(bn)[:, None, :, :].reshape(N_LAYERS, 1, LANE),
            jnp.stack(wea).astype(bf16),
            jnp.stack(gam).reshape(N_LAYERS, 1, LANE),
            jnp.stack(bet).reshape(N_LAYERS, 1, LANE),
            fc_w.astype(bf16),
            fc_b,
            tm, n_pad, g_pad, num_nodes)


# ---------------------------------------------------------------------------
# Pure-JAX reference: original (un-refactored, un-padded, full f32) formulation
# ---------------------------------------------------------------------------
def gnn_reference(x, edge_attr, edge_index, batch, num_nodes, num_graphs, params):
    src, dst = edge_index[0], edge_index[1]
    E = src.shape[0]
    adj = jnp.zeros((num_nodes, num_nodes), jnp.float32).at[dst, src].add(1.0)
    scat = jnp.zeros((num_nodes, E), jnp.float32).at[dst, jnp.arange(E)].set(1.0)
    onehot = (batch[None, :] == jnp.arange(num_graphs)[:, None]).astype(jnp.float32)
    pool = onehot / onehot.sum(axis=1, keepdims=True)

    h = x
    for i in range(N_LAYERS):
        p = params[f"conv{i + 1}"]
        xl = h @ p["wn"] + p["bn"]
        el = edge_attr @ p["we"] + p["be"]
        agg = adj @ xl + scat @ el + xl
        mean = agg.mean(axis=0, keepdims=True)
        var = ((agg - mean) ** 2).mean(axis=0, keepdims=True)
        h = jnp.maximum((agg - mean) * jax.lax.rsqrt(var + EPS) * p["gamma"] + p["beta"], 0.0)
    return (pool @ h) @ params["fc"]["w"] + params["fc"]["b"]


# ---------------------------------------------------------------------------
# Deterministic synthetic parameters
# ---------------------------------------------------------------------------
def make_params(key, input_dim, hidden_dim, output_dim, edge_dim):
    keys = jax.random.split(key, 16)

    def lin(k, fan_in, fan_out):
        bound = 1.0 / jnp.sqrt(fan_in)
        kw, kb = jax.random.split(k)
        w = jax.random.uniform(kw, (fan_in, fan_out), jnp.float32, -bound, bound)
        b = jax.random.uniform(kb, (1, fan_out), jnp.float32, -bound, bound)
        return w, b

    params = {}
    in_dims = [input_dim, hidden_dim, hidden_dim]
    for i in range(N_LAYERS):
        wn, bn = lin(keys[2 * i], in_dims[i], hidden_dim)
        we, be = lin(keys[2 * i + 1], edge_dim, hidden_dim)
        params[f"conv{i + 1}"] = dict(
            wn=wn, bn=bn, we=we, be=be,
            gamma=jnp.ones((1, hidden_dim), jnp.float32),
            beta=jnp.zeros((1, hidden_dim), jnp.float32))
    wf, bf = lin(keys[10], hidden_dim, output_dim)
    params["fc"] = dict(w=wf, b=bf)
    return params


if __name__ == "__main__":
    # small, module-consistent shapes
    N, E, G = 16, 24, 2
    INPUT_DIM, HIDDEN_DIM, OUTPUT_DIM, EDGE_DIM = 8, 32, 4, 6

    key = jax.random.PRNGKey(0)
    kx, ke, ks, kd, kp = jax.random.split(key, 5)

    x = jax.random.normal(kx, (N, INPUT_DIM), jnp.float32)
    edge_attr = jax.random.normal(ke, (E, EDGE_DIM), jnp.float32)
    src = jax.random.randint(ks, (E,), 0, N)
    dst = jax.random.randint(kd, (E,), 0, N)
    edge_index = jnp.stack([src, dst], axis=0)                      # [2, E]
    batch = jnp.concatenate([jnp.zeros(N // 2, jnp.int32),
                             jnp.ones(N - N // 2, jnp.int32)])      # node -> graph id

    params = make_params(kp, INPUT_DIM, HIDDEN_DIM, OUTPUT_DIM, EDGE_DIM)
    prep = prepare_inputs(x, edge_attr, edge_index, batch, N, G, params)

    out = gnn_forward(prep, G, OUTPUT_DIM)
    out = jax.block_until_ready(out)

    ref = gnn_reference(x, edge_attr, edge_index, batch, N, G, params)
    assert out.shape == (G, OUTPUT_DIM)
    # tolerance loosened for bf16 MXU operands (f32 accumulation, f32 reference)
    assert jnp.allclose(out, ref, rtol=5e-2, atol=5e-2), "Pallas output mismatch vs reference"

    print("KERNEL_OK")
</pallas_src>

<mosaic_0001>
module attributes {stable_mosaic.version = 11 : i64} {
  func.func @gnn_kernel(%arg0: i32, %arg1: i32, %arg2: memref<8x16xbf16, #tpu.memory_space<vmem>>, %arg3: memref<8x128xbf16, #tpu.memory_space<vmem>>, %arg4: memref<16x128xf32, #tpu.memory_space<vmem>>, %arg5: memref<8x16xbf16, #tpu.memory_space<vmem>>, %arg6: memref<1x128x128xbf16, #tpu.memory_space<vmem>>, %arg7: memref<1x1x128xf32, #tpu.memory_space<vmem>>, %arg8: memref<1x128x128xbf16, #tpu.memory_space<vmem>>, %arg9: memref<1x1x128xf32, #tpu.memory_space<vmem>>, %arg10: memref<1x1x128xf32, #tpu.memory_space<vmem>>, %arg11: memref<128x128xbf16, #tpu.memory_space<vmem>>, %arg12: memref<1x128xf32, #tpu.memory_space<vmem>>, %arg13: memref<8x128xf32, #tpu.memory_space<vmem>>, %arg14: memref<16x128xf32, #tpu.memory_space<vmem>>, %arg15: memref<16x128xbf16, #tpu.memory_space<vmem>>, %arg16: memref<1x128xf32, #tpu.memory_space<vmem>>, %arg17: memref<1x128xf32, #tpu.memory_space<vmem>>) attributes {dimension_semantics = [#tpu.dimension_semantics<arbitrary>, #tpu.dimension_semantics<arbitrary>], iteration_bounds = array<i64: 3, 2>, scalar_prefetch = 0 : i64, scratch_operands = 4 : i64, tpu.core_type = #tpu.core_type<tc>, window_params = [{transform_indices = @transform_0, window_bounds = array<i64: 8, 16>}, {transform_indices = @transform_1, window_bounds = array<i64: 8, 128>}, {pipeline_mode = #tpu.pipeline_mode<synchronous>, transform_indices = @transform_2, window_bounds = array<i64: 16, 128>}, {pipeline_mode = #tpu.pipeline_mode<synchronous>, transform_indices = @transform_3, window_bounds = array<i64: 8, 16>}, {transform_indices = @transform_4, window_bounds = array<i64: 1, 128, 128>}, {transform_indices = @transform_5, window_bounds = array<i64: 1, 1, 128>}, {transform_indices = @transform_6, window_bounds = array<i64: 1, 128, 128>}, {transform_indices = @transform_7, window_bounds = array<i64: 1, 1, 128>}, {transform_indices = @transform_8, window_bounds = array<i64: 1, 1, 128>}, {pipeline_mode = #tpu.pipeline_mode<synchronous>, transform_indices = @transform_9, window_bounds = array<i64: 128, 128>}, {pipeline_mode = #tpu.pipeline_mode<synchronous>, transform_indices = @transform_10, window_bounds = array<i64: 1, 128>}, {pipeline_mode = #tpu.pipeline_mode<synchronous>, transform_indices = @transform_11, window_bounds = array<i64: 8, 128>}]} {
    %c0_i32 = arith.constant 0 : i32
    %0 = arith.cmpi eq, %arg1, %c0_i32 : i32
    %1 = arith.extui %0 : i1 to i32
    %c0_i32_0 = arith.constant 0 : i32
    %2 = arith.cmpi ne, %1, %c0_i32_0 : i32
    scf.if %2 {
      %c0_i32_22 = arith.constant 0 : i32
      %29 = arith.cmpi eq, %arg0, %c0_i32_22 : i32
      %30 = arith.extui %29 : i1 to i32
      %c0_i32_23 = arith.constant 0 : i32
      %31 = arith.cmpi ne, %30, %c0_i32_23 : i32
      scf.if %31 {
        %c0_41 = arith.constant 0 : index
        %c0_42 = arith.constant 0 : index
        %47 = vector.load %arg4[%c0_41, %c0_42] : memref<16x128xf32, #tpu.memory_space<vmem>>, vector<16x128xf32>
        %c0_43 = arith.constant 0 : index
        %c0_44 = arith.constant 0 : index
        %48 = vector.load %arg14[%c0_43, %c0_44] : memref<16x128xf32, #tpu.memory_space<vmem>>, vector<16x128xf32>
        tpu.vector_store %arg14[%c0_43, %c0_44], %47 {strides = array<i32>} : memref<16x128xf32, #tpu.memory_space<vmem>>, vector<16x128xf32>,
      } else {
      }
      %c0_24 = arith.constant 0 : index
      %c0_25 = arith.constant 0 : index
      %32 = vector.load %arg14[%c0_24, %c0_25] : memref<16x128xf32, #tpu.memory_space<vmem>>, vector<16x128xf32>
      %33 = arith.truncf %32 : vector<16x128xf32> to vector<16x128xbf16>
      %c0_26 = arith.constant 0 : index
      %c0_27 = arith.constant 0 : index
      %c0_28 = arith.constant 0 : index
      %34 = vector.load %arg6[%c0_26, %c0_27, %c0_28] : memref<1x128x128xbf16, #tpu.memory_space<vmem>>, vector<1x128x128xbf16>
      %35 = vector.shape_cast %34 : vector<1x128x128xbf16> to vector<128x128xbf16>
      %cst_29 = arith.constant dense<0.000000e+00> : vector<16x128xf32>
      %36 = tpu.matmul %33, %35, %cst_29 {dimension_numbers = #tpu.dot_dimension_numbers<[1], [0], [0], [1], [0, 0, 1, 1], [], []>} : vector<16x128xbf16>, vector<128x128xbf16>, vector<16x128xf32> -> vector<16x128xf32>
      %c0_30 = arith.constant 0 : index
      %c0_31 = arith.constant 0 : index
      %c0_32 = arith.constant 0 : index
      %37 = vector.load %arg7[%c0_30, %c0_31, %c0_32] : memref<1x1x128xf32, #tpu.memory_space<vmem>>, vector<1x1x128xf32>
      %38 = vector.shape_cast %37 : vector<1x1x128xf32> to vector<1x128xf32>
      %39 = vector.broadcast %38 : vector<1x128xf32> to vector<16x128xf32>
      %40 = arith.addf %36, %39 : vector<16x128xf32>
      %41 = arith.truncf %40 : vector<16x128xf32> to vector<16x128xbf16>
      %c0_33 = arith.constant 0 : index
      %c0_34 = arith.constant 0 : index
      %42 = vector.load %arg15[%c0_33, %c0_34] : memref<16x128xbf16, #tpu.memory_space<vmem>>, vector<16x128xbf16>
      tpu.vector_store %arg15[%c0_33, %c0_34], %41 {strides = array<i32>} : memref<16x128xbf16, #tpu.memory_space<vmem>>, vector<16x128xbf16>,
      %cst_35 = arith.constant 0.000000e+00 : f32
      %43 = vector.broadcast %cst_35 : f32 to vector<1x128xf32>
      %c0_36 = arith.constant 0 : index
      %c0_37 = arith.constant 0 : index
      %44 = vector.load %arg16[%c0_36, %c0_37] : memref<1x128xf32, #tpu.memory_space<vmem>>, vector<1x128xf32>
      tpu.vector_store %arg16[%c0_36, %c0_37], %43 {strides = array<i32>} : memref<1x128xf32, #tpu.memory_space<vmem>>, vector<1x128xf32>,
      %cst_38 = arith.constant 0.000000e+00 : f32
      %45 = vector.broadcast %cst_38 : f32 to vector<1x128xf32>
      %c0_39 = arith.constant 0 : index
      %c0_40 = arith.constant 0 : index
      %46 = vector.load %arg17[%c0_39, %c0_40] : memref<1x128xf32, #tpu.memory_space<vmem>>, vector<1x128xf32>
      tpu.vector_store %arg17[%c0_39, %c0_40], %45 {strides = array<i32>} : memref<1x128xf32, #tpu.memory_space<vmem>>, vector<1x128xf32>,
    } else {
    }
    %c0 = arith.constant 0 : index
    %c0_1 = arith.constant 0 : index
    %3 = vector.load %arg2[%c0, %c0_1] : memref<8x16xbf16, #tpu.memory_space<vmem>>, vector<8x16xbf16>
    %c0_2 = arith.constant 0 : index
    %c0_3 = arith.constant 0 : index
    %4 = vector.load %arg15[%c0_2, %c0_3] : memref<16x128xbf16, #tpu.memory_space<vmem>>, vector<16x128xbf16>
    %cst = arith.constant dense<0.000000e+00> : vector<8x128xf32>
    %5 = tpu.matmul %3, %4, %cst {dimension_numbers = #tpu.dot_dimension_numbers<[1], [0], [0], [1], [0, 0, 1, 1], [], []>} : vector<8x16xbf16>, vector<16x128xbf16>, vector<8x128xf32> -> vector<8x128xf32>
    %c0_4 = arith.constant 0 : index
    %c0_5 = arith.constant 0 : index
    %6 = vector.load %arg3[%c0_4, %c0_5] : memref<8x128xbf16, #tpu.memory_space<vmem>>, vector<8x128xbf16>
    %c0_6 = arith.constant 0 : index
    %c0_7 = arith.constant 0 : index
    %c0_8 = arith.constant 0 : index
    %7 = vector.load %arg8[%c0_6, %c0_7, %c0_8] : memref<1x128x128xbf16, #tpu.memory_space<vmem>>, vector<1x128x128xbf16>
    %8 = vector.shape_cast %7 : vector<1x128x128xbf16> to vector<128x128xbf16>
    %cst_9 = arith.constant dense<0.000000e+00> : vector<8x128xf32>
    %9 = tpu.matmul %6, %8, %cst_9 {dimension_numbers = #tpu.dot_dimension_numbers<[1], [0], [0], [1], [0, 0, 1, 1], [], []>} : vector<8x128xbf16>, vector<128x128xbf16>, vector<8x128xf32> -> vector<8x128xf32>
    %10 = arith.addf %5, %9 : vector<8x128xf32>
    %c8_i32 = arith.constant 8 : i32
    %11 = arith.muli %arg1, %c8_i32 : i32
    %12 = tpu.assume_multiple %11, 8 : i32
    %13 = arith.index_cast %12 : i32 to index
    %c0_10 = arith.constant 0 : index
    %14 = vector.load %arg14[%13, %c0_10] : memref<16x128xf32, #tpu.memory_space<vmem>>, vector<8x128xf32>
    tpu.vector_store %arg14[%13, %c0_10], %10 {strides = array<i32>} : memref<16x128xf32, #tpu.memory_space<vmem>>, vector<8x128xf32>,
    %c0_11 = arith.constant 0 : index
    %c0_12 = arith.constant 0 : index
    %15 = vector.load %arg16[%c0_11, %c0_12] : memref<1x128xf32, #tpu.memory_space<vmem>>, vector<1x128xf32>
    %cst_13 = arith.constant dense<0.000000e+00> : vector<128xf32>
    %16 = vector.multi_reduction <add>, %10, %cst_13 [0] : vector<8x128xf32> to vector<128xf32>
    %17 = vector.shape_cast %16 : vector<128xf32> to vector<1x128xf32>
    %18 = arith.addf %15, %17 : vector<1x128xf32>
    %c0_14 = arith.constant 0 : index
    %c0_15 = arith.constant 0 : index
    %19 = vector.load %arg16[%c0_14, %c0_15] : memref<1x128xf32, #tpu.memory_space<vmem>>, vector<1x128xf32>
    tpu.vector_store %arg16[%c0_14, %c0_15], %18 {strides = array<i32>} : memref<1x128xf32, #tpu.memory_space<vmem>>, vector<1x128xf32>,
    %c0_16 = arith.constant 0 : index
    %c0_17 = arith.constant 0 : index
    %20 = vector.load %arg17[%c0_16, %c0_17] : memref<1x128xf32, #tpu.memory_space<vmem>>, vector<1x128xf32>
    %21 = arith.mulf %10, %10 : vector<8x128xf32>
    %cst_18 = arith.constant dense<0.000000e+00> : vector<128xf32>
    %22 = vector.multi_reduction <add>, %21, %cst_18 [0] : vector<8x128xf32> to vector<128xf32>
    %23 = vector.shape_cast %22 : vector<128xf32> to vector<1x128xf32>
    %24 = arith.addf %20, %23 : vector<1x128xf32>
    %c0_19 = arith.constant 0 : index
    %c0_20 = arith.constant 0 : index
    %25 = vector.load %arg17[%c0_19, %c0_20] : memref<1x128xf32, #tpu.memory_space<vmem>>, vector<1x128xf32>
    tpu.vector_store %arg17[%c0_19, %c0_20], %24 {strides = array<i32>} : memref<1x128xf32, #tpu.memory_space<vmem>>, vector<1x128xf32>,
    %c1_i32 = arith.constant 1 : i32
    %26 = arith.cmpi eq, %arg1, %c1_i32 : i32
    %27 = arith.extui %26 : i1 to i32
    %c0_i32_21 = arith.constant 0 : i32
    %28 = arith.cmpi ne, %27, %c0_i32_21 : i32
    scf.if %28 {
      %c0_22 = arith.constant 0 : index
      %c0_23 = arith.constant 0 : index
      %29 = vector.load %arg16[%c0_22, %c0_23] : memref<1x128xf32, #tpu.memory_space<vmem>>, vector<1x128xf32>
      %cst_24 = arith.constant 6.250000e-02 : f32
      %30 = vector.broadcast %cst_24 : f32 to vector<1x128xf32>
      %31 = arith.mulf %29, %30 : vector<1x128xf32>
      %c0_25 = arith.constant 0 : index
      %c0_26 = arith.constant 0 : index
      %32 = vector.load %arg17[%c0_25, %c0_26] : memref<1x128xf32, #tpu.memory_space<vmem>>, vector<1x128xf32>
      %cst_27 = arith.constant 6.250000e-02 : f32
      %33 = vector.broadcast %cst_27 : f32 to vector<1x128xf32>
      %34 = arith.mulf %32, %33 : vector<1x128xf32>
      %35 = arith.mulf %31, %31 : vector<1x128xf32>
      %36 = arith.subf %34, %35 : vector<1x128xf32>
      %cst_28 = arith.constant 0.000000e+00 : f32
      %37 = vector.broadcast %cst_28 : f32 to vector<1x128xf32>
      %38 = arith.maximumf %36, %37 : vector<1x128xf32>
      %c0_29 = arith.constant 0 : index
      %c0_30 = arith.constant 0 : index
      %c0_31 = arith.constant 0 : index
      %39 = vector.load %arg9[%c0_29, %c0_30, %c0_31] : memref<1x1x128xf32, #tpu.memory_space<vmem>>, vector<1x1x128xf32>
      %40 = vector.shape_cast %39 : vector<1x1x128xf32> to vector<1x128xf32>
      %cst_32 = arith.constant 9.99999974E-6 : f32
      %41 = vector.broadcast %cst_32 : f32 to vector<1x128xf32>
      %42 = arith.addf %38, %41 : vector<1x128xf32>
      %43 = math.rsqrt %42 : vector<1x128xf32>
      %44 = arith.mulf %40, %43 : vector<1x128xf32>
      %c0_33 = arith.constant 0 : index
      %c0_34 = arith.constant 0 : index
      %c0_35 = arith.constant 0 : index
      %45 = vector.load %arg10[%c0_33, %c0_34, %c0_35] : memref<1x1x128xf32, #tpu.memory_space<vmem>>, vector<1x1x128xf32>
      %46 = vector.shape_cast %45 : vector<1x1x128xf32> to vector<1x128xf32>
      %47 = arith.mulf %31, %44 : vector<1x128xf32>
      %48 = arith.subf %46, %47 : vector<1x128xf32>
      %c0_36 = arith.constant 0 : index
      %c0_37 = arith.constant 0 : index
      %49 = vector.load %arg14[%c0_36, %c0_37] : memref<16x128xf32, #tpu.memory_space<vmem>>, vector<16x128xf32>
      %50 = vector.broadcast %44 : vector<1x128xf32> to vector<16x128xf32>
      %51 = arith.mulf %49, %50 : vector<16x128xf32>
      %52 = vector.broadcast %48 : vector<1x128xf32> to vector<16x128xf32>
      %53 = arith.addf %51, %52 : vector<16x128xf32>
      %cst_38 = arith.constant 0.000000e+00 : f32
      %54 = vector.broadcast %cst_38 : f32 to vector<16x128xf32>
      %55 = arith.maximumf %53, %54 : vector<16x128xf32>
      %c0_39 = arith.constant 0 : index
      %c0_40 = arith.constant 0 : index
      %56 = vector.load %arg14[%c0_39, %c0_40] : memref<16x128xf32, #tpu.memory_space<vmem>>, vector<16x128xf32>
      tpu.vector_store %arg14[%c0_39, %c0_40], %55 {strides = array<i32>} : memref<16x128xf32, #tpu.memory_space<vmem>>, vector<16x128xf32>,
      %c2_i32 = arith.constant 2 : i32
      %57 = arith.cmpi eq, %arg0, %c2_i32 : i32
      %58 = arith.extui %57 : i1 to i32
      %c0_i32_41 = arith.constant 0 : i32
      %59 = arith.cmpi ne, %58, %c0_i32_41 : i32
      scf.if %59 {
        %c0_42 = arith.constant 0 : index
        %c0_43 = arith.constant 0 : index
        %60 = vector.load %arg5[%c0_42, %c0_43] : memref<8x16xbf16, #tpu.memory_space<vmem>>, vector<8x16xbf16>
        %c0_44 = arith.constant 0 : index
        %c0_45 = arith.constant 0 : index
        %61 = vector.load %arg14[%c0_44, %c0_45] : memref<16x128xf32, #tpu.memory_space<vmem>>, vector<16x128xf32>
        %62 = arith.truncf %61 : vector<16x128xf32> to vector<16x128xbf16>
        %cst_46 = arith.constant dense<0.000000e+00> : vector<8x128xf32>
        %63 = tpu.matmul %60, %62, %cst_46 {dimension_numbers = #tpu.dot_dimension_numbers<[1], [0], [0], [1], [0, 0, 1, 1], [], []>} : vector<8x16xbf16>, vector<16x128xbf16>, vector<8x128xf32> -> vector<8x128xf32>
        %64 = arith.truncf %63 : vector<8x128xf32> to vector<8x128xbf16>
        %c0_47 = arith.constant 0 : index
        %c0_48 = arith.constant 0 : index
        %65 = vector.load %arg11[%c0_47, %c0_48] : memref<128x128xbf16, #tpu.memory_space<vmem>>, vector<128x128xbf16>
        %cst_49 = arith.constant dense<0.000000e+00> : vector<8x128xf32>
        %66 = tpu.matmul %64, %65, %cst_49 {dimension_numbers = #tpu.dot_dimension_numbers<[1], [0], [0], [1], [0, 0, 1, 1], [], []>} : vector<8x128xbf16>, vector<128x128xbf16>, vector<8x128xf32> -> vector<8x128xf32>
        %c0_50 = arith.constant 0 : index
        %c0_51 = arith.constant 0 : index
        %67 = vector.load %arg12[%c0_50, %c0_51] : memref<1x128xf32, #tpu.memory_space<vmem>>, vector<1x128xf32>
        %68 = vector.broadcast %67 : vector<1x128xf32> to vector<8x128xf32>
        %69 = arith.addf %66, %68 : vector<8x128xf32>
        %c0_52 = arith.constant 0 : index
        %c0_53 = arith.constant 0 : index
        %70 = vector.load %arg13[%c0_52, %c0_53] : memref<8x128xf32, #tpu.memory_space<vmem>>, vector<8x128xf32>
        tpu.vector_store %arg13[%c0_52, %c0_53], %69 {strides = array<i32>} : memref<8x128xf32, #tpu.memory_space<vmem>>, vector<8x128xf32>,
      } else {
      }
    } else {
    }
    return
  }
  func.func @transform_0(%arg0: i32, %arg1: i32) -> (i32, i32) {
    %c0_i32 = arith.constant 0 : i32
    %c0_i32_0 = arith.constant 0 : i32
    return %arg1, %c0_i32 : i32, i32
  }
  func.func @transform_1(%arg0: i32, %arg1: i32) -> (i32, i32) {
    %c0_i32 = arith.constant 0 : i32
    %c0_i32_0 = arith.constant 0 : i32
    return %arg1, %c0_i32 : i32, i32
  }
  func.func @transform_2(%arg0: i32, %arg1: i32) -> (i32, i32) {
    %c0_i32 = arith.constant 0 : i32
    %c0_i32_0 = arith.constant 0 : i32
    %c0_i32_1 = arith.constant 0 : i32
    return %c0_i32, %c0_i32_0 : i32, i32
  }
  func.func @transform_3(%arg0: i32, %arg1: i32) -> (i32, i32) {
    %c0_i32 = arith.constant 0 : i32
    %c0_i32_0 = arith.constant 0 : i32
    %c0_i32_1 = arith.constant 0 : i32
    return %c0_i32, %c0_i32_0 : i32, i32
  }
  func.func @transform_4(%arg0: i32, %arg1: i32) -> (i32, i32, i32) {
    %c0_i32 = arith.constant 0 : i32
    %c0_i32_0 = arith.constant 0 : i32
    %c0_i32_1 = arith.constant 0 : i32
    return %arg0, %c0_i32, %c0_i32_0 : i32, i32, i32
  }
  func.func @transform_5(%arg0: i32, %arg1: i32) -> (i32, i32, i32) {
    %c0_i32 = arith.constant 0 : i32
    %c0_i32_0 = arith.constant 0 : i32
    %c0_i32_1 = arith.constant 0 : i32
    return %arg0, %c0_i32, %c0_i32_0 : i32, i32, i32
  }
  func.func @transform_6(%arg0: i32, %arg1: i32) -> (i32, i32, i32) {
    %c0_i32 = arith.constant 0 : i32
    %c0_i32_0 = arith.constant 0 : i32
    %c0_i32_1 = arith.constant 0 : i32
    return %arg0, %c0_i32, %c0_i32_0 : i32, i32, i32
  }
  func.func @transform_7(%arg0: i32, %arg1: i32) -> (i32, i32, i32) {
    %c0_i32 = arith.constant 0 : i32
    %c0_i32_0 = arith.constant 0 : i32
    %c0_i32_1 = arith.constant 0 : i32
    return %arg0, %c0_i32, %c0_i32_0 : i32, i32, i32
  }
  func.func @transform_8(%arg0: i32, %arg1: i32) -> (i32, i32, i32) {
    %c0_i32 = arith.constant 0 : i32
    %c0_i32_0 = arith.constant 0 : i32
    %c0_i32_1 = arith.constant 0 : i32
    return %arg0, %c0_i32, %c0_i32_0 : i32, i32, i32
  }
  func.func @transform_9(%arg0: i32, %arg1: i32) -> (i32, i32) {
    %c0_i32 = arith.constant 0 : i32
    %c0_i32_0 = arith.constant 0 : i32
    %c0_i32_1 = arith.constant 0 : i32
    return %c0_i32, %c0_i32_0 : i32, i32
  }
  func.func @transform_10(%arg0: i32, %arg1: i32) -> (i32, i32) {
    %c0_i32 = arith.constant 0 : i32
    %c0_i32_0 = arith.constant 0 : i32
    %c0_i32_1 = arith.constant 0 : i32
    return %c0_i32, %c0_i32_0 : i32, i32
  }
  func.func @transform_11(%arg0: i32, %arg1: i32) -> (i32, i32) {
    %c0_i32 = arith.constant 0 : i32
    %c0_i32_0 = arith.constant 0 : i32
    %c0_i32_1 = arith.constant 0 : i32
    return %c0_i32, %c0_i32_0 : i32, i32
  }
}

</mosaic_0001>

<bundles_post_ra>
// kernel: tpu_custom_call.1
= control target key start
LH: loop header
LB: loop body
LE: loop exit
PB: predicated region body
PF: predicated region fallthrough
CT: control target
= control target key end

     0   :  { %s2392_s0 = inlined_call_operand.hbm [shape: bf16[16,16], index: 0, kind: input, shape index: {}]   ;;  %s2393_s1 = inlined_call_operand.hbm [shape: bf16[16,128], index: 1, kind: input, shape index: {}]   ;;  %s2394_s2 = inlined_call_operand.hbm [shape: f32[16,128], index: 2, kind: input, shape index: {}]   ;;  %s2395_s3 = inlined_call_operand.vmem [shape: bf16[8,16], index: 3, kind: input, shape index: {}]   ;;  %s2396_s4 = inlined_call_operand.hbm [shape: bf16[3,128,128], index: 4, kind: input, shape index: {}]   ;;  %s2397_s5 = inlined_call_operand.vmem [shape: f32[3,1,128], index: 5, kind: input, shape index: {}]   ;;  %s2398_s6 = inlined_call_operand.hbm [shape: bf16[3,128,128], index: 6, kind: input, shape index: {}]   ;;  %s2399_s7 = inlined_call_operand.vmem [shape: f32[3,1,128], index: 7, kind: input, shape index: {}]   ;;  %s2400_s8 = inlined_call_operand.vmem [shape: f32[3,1,128], index: 8, kind: input, shape index: {}]   ;;  %s2401_s9 = inlined_call_operand.hbm [shape: bf16[128,128], index: 9, kind: input, shape index: {}]   ;;  %s2402_s10 = inlined_call_operand.vmem [shape: f32[1,128], index: 10, kind: input, shape index: {}]   ;;  %s2403_s11 = inlined_call_operand.hbm [shape: f32[8,128], index: 11, kind: output, shape index: {}]  }
   0x1   :  { %2416 = sst [smem:[#allocation30_spill]] %s2394_s2 }
   0x2   :  { %2417 = sst [smem:[#allocation31_spill]] %s2395_s3 }
   0x3   :  { %2418 = sst [smem:[#allocation32_spill]] %s2396_s4 }
   0x4   :  { %2419 = sst [smem:[#allocation33_spill]] %s2397_s5 }
   0x5   :  { %2420 = sst [smem:[#allocation34_spill]] %s2398_s6 }
   0x6   :  { %2421 = sst [smem:[#allocation35_spill]] %s2399_s7 }
   0x7   :  { %2422 = sst [smem:[#allocation36_spill]] %s2400_s8 }
   0x8   :  { %2423 = sst [smem:[#allocation37_spill]] %s2401_s9 }
   0x9   :  { %2424 = sst [smem:[#allocation38_spill]] %s2402_s10 }
   0xa   :  { %2425 = sst [smem:[#allocation39_spill]] %s2403_s11 }
   0xb   :  { %16 = vsyncpa [#allocation7], 0 }
   0xc   :  { %18 = vsyncpa [#allocation7 + $0x1], 0 }
   0xd   :  { %19 = vsyncpa [#allocation10], 0 }
   0xe   :  { %21 = vsyncpa [#allocation10 + $0x1], 0 }
   0xf   :  { %22 = vsyncpa [#allocation13], 0 }
  0x10   :  { %24 = vsyncpa [#allocation13 + $0x1], 0 }
  0x11   :  { %25 = vsyncpa [#allocation16], 0 }
  0x12   :  { %26 = vsyncpa [#allocation8], 0  ;;  %s2020_s17 = smov 0   ;;  %s2022_s18 = smov 0  }
  0x13   :  { %s2024_s19 = smov 0   ;;  %s2026_s20 = smov 0  }
  0x14   :  { %s2028_s21 = smov 0   ;;  %s2030_s22 = smov 0  }
  0x15   :  { %s2032_s23 = smov 0   ;;  %s2034_s24 = smov 0  }
  0x16   :  { %s2036_s25 = smov 0   ;;  %s2038_s26 = smov 0  }
  0x17   :  { %s2040_s27 = smov 0  }
  0x18 LB: > { %2426 = sst [smem:[#allocation24_spill]] %s1905_s18  ;;  %s2074_s28 = sadd.s32 4294967295, %s1941_s27   ;;  %s1941_s27 = sphi %s2040_s27, %s32_s27   ;;  %s1937_s26 = sphi %s2038_s26, %s2480_s26   ;;  %s1933_s25 = sphi %s2036_s25, %s2479_s25   ;;  %s1929_s24 = sphi %s2034_s24, %s2478_s24   ;;  %s1925_s23 = sphi %s2032_s23, %s2477_s23   ;;  %s1921_s22 = sphi %s2030_s22, %s2476_s22   ;;  %s1917_s21 = sphi %s2028_s21, %s2475_s21   ;;  %s1913_s20 = sphi %s2026_s20, %s2474_s20   ;;  %s1909_s19 = sphi %s2024_s19, %s2473_s19   ;;  %s1905_s18 = sphi %s2022_s18, %s2472_s18   ;;  %s1901_s17 = sphi %s2020_s17, %s2469_s17  }
  0x19   : > { %2427 = sst [smem:[#allocation25_spill]] %s1925_s23  ;;  %p158_p0 = scmp.ne.s32.totalorder %s1905_s18, %s1901_s17 }
  0x1a   : > { %2428 = sst [smem:[#allocation26_spill]] %s1929_s24  ;;  %p2409_p1 = scmp.eq.s32.totalorder %s2074_s28, 0 }
  0x1b   : > { %p1295_p2 = scmp.ge.s32.totalorder %s1941_s27, 1  ;;  %p336_p3 = scmp.lt.s32.totalorder %s1941_s27, 7 }
  0x1c   : > { %p2082_p4 = por %p158_p0, %p2409_p1  ;;  %s1943_s12 = smov [#allocation11]  }
  0x1d   : > { %p2086_p5 = pnand %p1295_p2, %p336_p3  ;;  %s348_s13 = sshll.u32 %s1943_s12, 4  ;;  %s349_s13 = int_to_ptr.vmem [resolvable:$true] %s348_s13 }
  0x1e   : > { %s2429_s29 = scalar_select %p2082_p4, 1, 0 }
  0x1f   : > { %p1488_p6 = pneg %p2086_p5  ;;  %p59_p8 = scmp.eq.s32.totalorder %s1941_s27, 0 }
  0x20   : > { %2430 = sst [smem:[#allocation27_spill]] %s2429_s29  ;;  %s1654_s15 = scalar_lea.vmem %s349_s13, 256 }
  0x21   : > { %p2094_p7 = pnand %p1488_p6, %p2409_p1  ;;  %p1655_p10 = scmp.ne.s32.totalorder %s349_s13, %s1654_s15 }
  0x22   : > { %p1662_p13 = scmp.lt.s32.totalorder %s349_s13, %s349_s13  ;;  %p1663_p0 = scmp.lt.s32.totalorder %s1654_s15, %s1654_s15 }
  0x23   : > { %p1645_p9 = pneg %p2094_p7 }
  0x24   : > { %p1664_p2 = por %p1663_p0, %p1662_p13 }
  0x25   : > { %p1657_p11 = pnand %p1655_p10, %p1645_p9 }
  0x27   : > { %p1658_p12 = pneg %p1657_p11 }
  0x29   : > { %p1665_p3 = pnand %p1664_p2, %p1658_p12 }
  0x2b   : > { %1668 = shalt.err (!%p1665_p3)
}
  0x2c   : > { %s1944_s16 = smov 128   ;;  %s1945_s17 = smov 8  }
  0x2d   : > { %s2433_s2 = sld [smem:[#allocation30_spill]]  ;;  %p152_p6 = scmp.ne.s32.totalorder %s1909_s19, %s1905_s18 }
  0x2e   : > { %p2408_p11 = scmp.lt.s32.totalorder %s1941_s27, 6  ;;  %s2410_s15 = sand.u32 1, %s1941_s27  }
  0x2f   : > { %p154_p10 = por %p152_p6, %p59_p8  ;;  %s419_s10 = sand.u32 1, %s1909_s19  }
  0x30   : > { %s2116_s3 = sshll.u32 %s419_s10, 6  ;;  %s1356_s23 = sshll.u32 %s1937_s26, 10 }
  0x31   : > { %s2434_s4 = sld [smem:[#allocation32_spill]]  ;;  %s421_s24 = scalar_lea.vmem [#allocation12], %s2116_s3 }
  0x32   : > { %s428_s29 = sshll.u32 %s421_s24, 4  ;;  %p2125_p12 = pnand %p2408_p11, %p154_p10  ;;  %s429_s29 = int_to_ptr.vmem [resolvable:$true] %s428_s29 }
  0x33   : > { %1491 = dma.hbm_to_vmem [thread:$0]  (!%p2094_p7), %s2433_s2, 256, %s349_s13, [#allocation10], %s1944_s16, %s1944_s16, %s1945_s17  }
  0x34   : > { %s2436_s6 = sld [smem:[#allocation34_spill]]  ;;  %s2137_s12 = scalar_lea.sflag [#allocation13], %s2410_s15 }
  0x35   : > { %p1671_p13 = pneg %p2125_p12  ;;  %s1682_s7 = scalar_lea.vmem %s429_s29, 1024 }
  0x36   : > { %p1683_p0 = scmp.ne.s32.totalorder %s429_s29, %s1682_s7  ;;  %s1946_s8 = smov [#allocation12]  }
  0x37   : > { %s427_s5 = scalar_lea.hbm %s2434_s4, %s1356_s23  ;;  %s1687_s24 = sshll.u32 %s1946_s8, 4  ;;  %s1688_s24 = int_to_ptr.vmem [resolvable:$false] %s1687_s24 }
  0x38   : > { %p1685_p2 = pnand %p1683_p0, %p1671_p13  ;;  %s1689_s13 = scalar_lea.vmem %s1688_s24, 2048 }
  0x39   : > { %p1690_p6 = scmp.lt.s32.totalorder %s429_s29, %s1688_s24  ;;  %p1691_p10 = scmp.lt.s32.totalorder %s1689_s13, %s1682_s7 }
  0x3a   : > { %s2133_s17 = scalar_lea.hbm %s2436_s6, %s1356_s23  ;;  %p1686_p3 = pneg %p1685_p2 }
  0x3b   : > { %p1692_p11 = por %p1691_p10, %p1690_p6 }
  0x3d   : > { %p1693_p1 = pnand %p1692_p11, %p1686_p3 }
  0x3f   : > { %1696 = shalt.err (!%p1693_p1)
}
  0x40   : > { %s2411_s23 = smov 64   ;;  %s2412_s16 = smov 4  }
  0x41   : > { %1504 = dma.hbm_to_vmem [thread:$0]  (!%p2125_p12), %s427_s5, 1024, %s429_s29, %s2137_s12, %s2411_s23, %s2411_s23, %s2412_s16  }
  0x42   : > { %s448_s10 = scalar_lea.vmem [#allocation14], %s2116_s3  ;;  %s1949_s15 = smov [#allocation15]  }
  0x43   : > { %s2151_s8 = sshll.u32 %s448_s10, 4  ;;  %s364_s24 = sshll.u32 %s1949_s15, 4  ;;  %s365_s24 = int_to_ptr.vmem [resolvable:$true] %s364_s24  ;;  %s2226_s8 = int_to_ptr.vmem [resolvable:$true] %s2151_s8 }
  0x44   : > { %s1708_s13 = scalar_lea.vmem %s365_s24, 1024  ;;  %p1716_p2 = scmp.lt.s32.totalorder %s365_s24, %s365_s24 }
  0x45   : > { %p1709_p11 = scmp.ne.s32.totalorder %s365_s24, %s1708_s13  ;;  %p1717_p3 = scmp.lt.s32.totalorder %s1708_s13, %s1708_s13 }
  0x47   : > { %p1711_p1 = pnand %p1709_p11, %p1645_p9  ;;  %p1718_p6 = por %p1717_p3, %p1716_p2 }
  0x49   : > { %p1712_p0 = pneg %p1711_p1 }
  0x4b   : > { %p1719_p10 = pnand %p1718_p6, %p1712_p0 }
  0x4d   : > { %1722 = shalt.err (!%p1719_p10)
}
  0x4e   : > { %s2437_s9 = sld [smem:[#allocation37_spill]]  ;;  %s41_s29 = sadd.s32 1, %s1933_s25 }
  0x4f   : > { %s44_s14 = sadd.s32 1, %s1937_s26  ;;  %p42_p9 = scmp.ge.s32.totalorder %s41_s29, 2 }
  0x50   : > { %s51_s15 = sadd.s32 1, %s1921_s22  ;;  %p58_p11 = scmp.ne.s32.totalorder %s1921_s22, %s1917_s21 }
  0x51   : > { %p64_p1 = scmp.ne.s32.totalorder %s1917_s21, %s1913_s20  ;;  %s2482_s29 = smov (%p42_p9, %s41_s29), 0 }
  0x52   : > { %2438 = sst [smem:[#allocation28_spill]] %s2482_s29  ;;  %s2484_s14 = smov (!%p42_p9, %s44_s14), %s1937_s26 }
  0x53   : > { %s48_s7 = ssub.s32 %s1933_s25, %s2482_s29  ;;  %p2178_p0 = por %p59_p8, %p58_p11 }
  0x54   : > { %1494 = dma.hbm_to_vmem [thread:$0]  (!%p2094_p7), %s2437_s9, 1024, %s365_s24, [#allocation16], %s2411_s23, %s2411_s23, %s2412_s16  }
  0x55   : > { %p46_p7 = scmp.ge.s32.totalorder %s2484_s14, 3  ;;  %p49_p2 = scmp.eq.s32.totalorder %s48_s7, 0 }
  0x56   : > { %p2440_p3 = scmp.eq.s32.totalorder %s2074_s28, 0  ;;  %s381_s20 = sand.u32 1, %s1921_s22  }
  0x57   : > { %s2486_s14 = smov (%p46_p7, %s2484_s14), 0  ;;  %s1299_s5 = sshll.u32 %s381_s20, 2 }
  0x58   : > { %p2184_p6 = por %p2440_p3, %p64_p1  ;;  %2442 = sst [smem:[#allocation29_spill]] %s2486_s14 }
  0x59   : > { %s2192_s13 = scalar_select %p49_p2, %s1921_s22, %s51_s15  }
  0x5a   : > { %s142_s3 = ssub.s32 %s1937_s26, %s2486_s14  ;;  %s1300_s23 = sshll.u32 %s1933_s25, 6 }
  0x5b   : > { %p143_p8 = scmp.eq.s32.totalorder %s142_s3, 0  ;;  %s2443_s16 = sadd.s32 1, %s1909_s19 }
  0x5c   : > { %s390_s6 = scalar_lea.hbm %s2392_s0, %s1300_s23  ;;  %s385_s9 = scalar_lea.vmem [#allocation6], %s1299_s5 }
  0x5d   : > { %s2200_s2 = scalar_select %p143_p8, %s1909_s19, %s2443_s16  }
  0x5e   : > { %s392_s29 = sshll.u32 %s385_s9, 4  ;;  %p2444_p10 = scmp.lt.s32.totalorder %s1941_s27, 6  ;;  %s393_s29 = int_to_ptr.vmem [resolvable:$true] %s392_s29 }
  0x5f   : > { %s2216_s16 = scalar_lea.hbm %s2393_s1, %s1300_s23  ;;  %s382_s14 = scalar_lea.sflag [#allocation7], %s381_s20 }
  0x60   : > { %p2209_p9 = pnand %p2444_p10, %p2178_p0  ;;  %s1736_s4 = scalar_lea.vmem %s393_s29, 64 }
  0x61   : > { %p1737_p1 = scmp.ne.s32.totalorder %s393_s29, %s1736_s4  ;;  %s1950_s9 = smov [#allocation6]  }
  0x62   : > { %p1725_p11 = pneg %p2209_p9  ;;  %s1741_s10 = sshll.u32 %s1950_s9, 4  ;;  %s1742_s10 = int_to_ptr.vmem [resolvable:$false] %s1741_s10 }
  0x63   : > { %s1743_s7 = scalar_lea.vmem %s1742_s10, 128  ;;  %p1744_p0 = scmp.lt.s32.totalorder %s393_s29, %s1742_s10 }
  0x64   : > { %p1739_p7 = pnand %p1737_p1, %p1725_p11  ;;  %p1745_p3 = scmp.lt.s32.totalorder %s1743_s7, %s1736_s4 }
  0x66   : > { %p1740_p2 = pneg %p1739_p7  ;;  %p1746_p8 = por %p1745_p3, %p1744_p0 }
  0x68   : > { %p1747_p10 = pnand %p1746_p8, %p1740_p2 }
  0x6a   : > { %1750 = shalt.err (!%p1747_p10)
}
  0x6b   : > { %1498 = dma.hbm_to_vmem [thread:$0]  (!%p2209_p9), %s390_s6, 64, %s393_s29, %s382_s14  }
  0x6c   : > { %s403_s23 = scalar_lea.vmem [#allocation9], %s1299_s5  ;;  %s2446_s15 = sand.u32 1, %s1941_s27  }
  0x6d   : > { %s410_s20 = sshll.u32 %s403_s23, 4  ;;  %s400_s3 = scalar_lea.sflag [#allocation10], %s2446_s15  ;;  %s411_s20 = int_to_ptr.vmem [resolvable:$true] %s410_s20 }
  0x6e   : > { %s1764_s9 = scalar_lea.vmem %s411_s20, 64  ;;  %s1951_s4 = smov [#allocation9]  }
  0x6f   : > { %p1765_p1 = scmp.ne.s32.totalorder %s411_s20, %s1764_s9  ;;  %s1769_s10 = sshll.u32 %s1951_s4, 4  ;;  %s1770_s10 = int_to_ptr.vmem [resolvable:$false] %s1769_s10 }
  0x70   : > { %s1771_s7 = scalar_lea.vmem %s1770_s10, 128  ;;  %p1772_p0 = scmp.lt.s32.totalorder %s411_s20, %s1770_s10 }
  0x71   : > { %p1767_p7 = pnand %p1765_p1, %p1725_p11  ;;  %p1773_p3 = scmp.lt.s32.totalorder %s1771_s7, %s1764_s9 }
  0x73   : > { %p1768_p2 = pneg %p1767_p7  ;;  %p1774_p8 = por %p1773_p3, %p1772_p0 }
  0x75   : > { %p1775_p10 = pnand %p1774_p8, %p1768_p2 }
  0x77   : > { %1778 = shalt.err (!%p1775_p10)
}
  0x78   : > { %1501 = dma.hbm_to_vmem [thread:$0]  (!%p2209_p9), %s2216_s16, 64, %s411_s20, %s400_s3  }
  0x79   : > { %s1792_s6 = scalar_lea.vmem %s2226_s8, 1024  ;;  %s1952_s29 = smov [#allocation14]  }
  0x7a   : > { %p1793_p11 = scmp.ne.s32.totalorder %s2226_s8, %s1792_s6  ;;  %s1797_s14 = sshll.u32 %s1952_s29, 4  ;;  %s1798_s14 = int_to_ptr.vmem [resolvable:$false] %s1797_s14 }
  0x7b   : > { %s1799_s5 = scalar_lea.vmem %s1798_s14, 2048  ;;  %p1800_p2 = scmp.lt.s32.totalorder %s2226_s8, %s1798_s14 }
  0x7c   : > { %p1795_p1 = pnand %p1793_p11, %p1671_p13  ;;  %p1801_p0 = scmp.lt.s32.totalorder %s1799_s5, %s1792_s6 }
  0x7e   : > { %p1796_p7 = pneg %p1795_p1  ;;  %p1802_p3 = por %p1801_p0, %p1800_p2 }
  0x80   : > { %p1803_p8 = pnand %p1802_p3, %p1796_p7 }
  0x82   : > { %1806 = shalt.err (!%p1803_p8)
}
  0x83   : > { %s2447_s18 = smov 4   ;;  %s2448_s23 = smov 64  }
  0x84   : > { %1507 = dma.hbm_to_vmem [thread:$0]  (!%p2125_p12), %s2133_s17, 1024, %s2226_s8, %s2137_s12, %s2448_s23, %s2448_s23, %s2447_s18  }
  0x85   : > { %479 = sbr.rel (%p2086_p5) target bundleno = 1133 (0x46d), region = 64  ;;  %s481_s16 = sand.u32 (!%p2086_p5), 1, %s1917_s21  }
  0x86   : > { %s2253_s20 = sshll.u32 (!%p2086_p5), %s481_s16, 2  ;;  %s482_s15 = scalar_lea.sflag (!%p2086_p5), [#allocation7], %s481_s16 }
  0x87   : > { %s485_s3 = scalar_lea.vmem (!%p2086_p5), [#allocation6], %s2253_s20 }
  0x8a   : > { %1876 = dma.done.wait (%p2184_p6), %s482_s15, 64  }
  0x8b   : > { %1878 = vsyncadd (%p2184_p6), %s482_s15, 4294967232  ;;  %s490_s11 = sand.u32 1, %s2074_s28   ;;  %s494_s30 = scalar_lea.vmem [#allocation9], %s2253_s20 }
  0x8c   : > { %s491_s17 = scalar_lea.sflag [#allocation10], %s490_s11 }
  0x8d   : > { %1880 = dma.done.wait (%p2184_p6), %s491_s17, 64  }
  0x8e   : > { %1882 = vsyncadd (%p2184_p6), %s491_s17, 4294967232  ;;  %p2449_p5 = scmp.eq.s32.totalorder %s2074_s28, 0 }
  0x90   : > { %1884 = dma.done.wait (%p2449_p5), [#allocation10], 256   ;;  %p2450_p12 = pmov %p2449_p5 }
  0x91   : > { %s2451_s12 = sld [smem:[#allocation24_spill]]  ;;  %s504_s10 = scalar_lea.sflag [#allocation13], %s490_s11 }
  0x92   : > { %1886 = vsyncadd (%p2450_p12), [#allocation10], 4294967040 }
  0x97   : > { %s505_s9 = sand.u32 1, %s2451_s12  }
  0x98   : > { %s1313_s4 = sshll.u32 %s505_s9, 6 }
  0x99   : > { %s2271_s7 = scalar_lea.vmem [#allocation12], %s1313_s4 }
  0x9a   : > { %1888 = dma.done.wait (%p2082_p4), %s504_s10, 2048  }
  0x9b   : > { %1890 = vsyncadd (%p2082_p4), %s504_s10, 4294965248  ;;  %s2277_s24 = scalar_lea.vmem [#allocation14], %s1313_s4  ;;  %p2453_p13 = pmov %p2449_p5 }
  0x9c   : > { %p2454_p6 = pmov %p2449_p5 }
  0x9d   : > { %1892 = dma.done.wait (%p2453_p13), [#allocation16], 1024  }
  0x9e   : > { %1894 = vsyncadd (%p2454_p6), [#allocation16], 4294966272  ;;  %s2455_s6 = sld [smem:[#allocation26_spill]] }
  0x9f   : > { %s2456_s5 = sld [smem:[#allocation33_spill]] }
  0xa0   : > { %s2457_s15 = sld [smem:[#allocation35_spill]] }
  0xa1   : > { %s2458_s8 = sld [smem:[#allocation36_spill]] }
  0xa2   : > { %s2459_s4 = sld [smem:[#allocation25_spill]] }
  0xa4   : > { %p578_p9 = scmp.lt.s32.totalorder %s2455_s6, 2 }
  0xa6   : > { %s2488_s6 = smov (!%p578_p9, %s2455_s6), 2 }
  0xa7   : > { %s580_s18 = scalar_lea.vmem %s2456_s5, %s2488_s6  ;;  %s583_s11 = scalar_lea.vmem %s2457_s15, %s2488_s6 }
  0xa8   : > { %s586_s9 = scalar_lea.vmem %s2458_s8, %s2488_s6  ;;  %p1316_p4 = scmp.ne.s32.totalorder %s2459_s4, 0 }
  0xa9   : > { %s2460_s10 = sld [smem:[#allocation26_spill]] (!%p1316_p4) }
  0xaa   : > { %591 = sbr.rel (%p1316_p4) target bundleno = 419 (0x1a3), region = 92 }
  0xaf   : > { %p1317_p10 = scmp.ne.s32.totalorder %s2460_s10, 0 }
  0xb1   : > { %595 = sbr.rel (%p1317_p10) target bundleno = 184 (0xb8), region = 96 }
  0xb6   : > { %v596_v0 = vld [vmem:[#allocation11] sm:$0xff]  ;;  %v597_v1 = vld [vmem:[#allocation11 + $0x8] sm:$0xff] }
  0xb7   : > { %598 = vst [vmem:[#allocation2] sm:$0xff] %v596_v0  ;;  %599 = vst [vmem:[#allocation2 + $0x8] sm:$0xff] %v597_v1 }
  0xb8 PF: > { %v1616_v2 = vld [vmem:[%s2271_s7 + $0x38] sm:$0xff]   ;;  %v1953_v3 = vmov 0.0   ;;  %v1617_v4 = vld [vmem:[%s2271_s7 + $0x30] sm:$0xff]   ;;  %vm1954_vm0 = vmmov 0   ;;  %v1618_v5 = vld [vmem:[%s2271_s7 + $0x28] sm:$0xff]  }
  0xb9   : > { %1396 = vmatprep.subr.bf16.mxu0 %v1953_v3  ;;  %725 = vst [vmem:[#allocation4] sm:$0x1] %v1953_v3  ;;  %726 = vst [vmem:[#allocation5] sm:$0x1] %v1953_v3  ;;  %1412 = vmatprep.mubr.msk.bf16.mxu0 %vm1954_vm0, %v1953_v3  ;;  %v1619_v6 = vld [vmem:[%s2271_s7 + $0x20] sm:$0xff]   ;;  %v1620_v7 = vld [vmem:[%s2271_s7 + $0x18] sm:$0xff]  }
  0xba   : > { %1397 = vmatpush3.bf16.msra.mxu0 %v1616_v2  ;;  %v1621_v8 = vld [vmem:[%s2271_s7 + $0x10] sm:$0xff]   ;;  %v1622_v9 = vld [vmem:[%s2271_s7 + $0x8] sm:$0xff]   ;;  %v1623_v10 = vld [vmem:[%s2271_s7] sm:$0xff]  }
  0xbb   : > { %1398 = vmatprep.subr.bf16.mxu0 %v1953_v3  ;;  %v1318_v15 = vld [vmem:[%s580_s18] ss:$0 sm:$0xff] }
  0xbe   : > { %1399 = vmatpush3.bf16.msra.mxu0 %v1617_v4  ;;  %v600_v11 = vld [vmem:[#allocation2] sm:$0xff]  ;;  %v601_v12 = vld [vmem:[#allocation2 + $0x8] sm:$0xff] }
  0xbf   : > { %1400 = vmatprep.subr.bf16.mxu0 %v1953_v3  ;;  %v602_v13 = vpack.c.bf16 %v601_v12, %v600_v11 }
  0xc2   : > { %1401 = vmatpush3.bf16.msra.mxu0 %v1618_v5 }
  0xc3   : > { %1402 = vmatprep.subr.bf16.mxu0 %v1953_v3 }
  0xc6   : > { %1403 = vmatpush3.bf16.msra.mxu0 %v1619_v6 }
  0xc7   : > { %1404 = vmatprep.subr.bf16.mxu0 %v1953_v3 }
  0xca   : > { %1405 = vmatpush3.bf16.msra.mxu0 %v1620_v7 }
  0xcb   : > { %1406 = vmatprep.subr.bf16.mxu0 %v1953_v3 }
  0xce   : > { %1407 = vmatpush3.bf16.msra.mxu0 %v1621_v8 }
  0xcf   : > { %1408 = vmatprep.subr.bf16.mxu0 %v1953_v3 }
  0xd2   : > { %1409 = vmatpush3.bf16.msra.mxu0 %v1622_v9 }
  0xd3   : > { %1410 = vmatprep.subr.bf16.mxu0 %v1953_v3 }
  0xd6   : > { %1411 = vmatpush3.bf16.msra.mxu0 %v1623_v10 }
  0xd9   : > { %1413 = vmatmul.mubr.bf16.vlgmr.msra.gmra.mxu0 %v602_v13 }
 0x199   : > { %v708_v14 = vpop.f32.mrf.mxu0 }
 0x19a   : > { %v709_v18 = vadd.f32 %v1318_v15, %v708_v14 }
 0x19b   : > { %v1414_v16 = vpop.f32.mrf.mxu0 }
 0x19d   : > { %v711_v17 = vpop.f32.mrf.mxu0 }
 0x19e   : > { %v712_v19 = vadd.f32 %v1318_v15, %v711_v17 }
 0x19f   : > { %v1415_v20 = vpop.f32.mrf.mxu0 }
 0x1a0   : > { %v1363_v21 = vpack.c.bf16 %v712_v19, %v709_v18 }
 0x1a2   : > { %1364 = vst [vmem:[#allocation3] sm:$0xff] %v1363_v21  }
 0x1a3 PF: > { %v1624_v22 = vld [vmem:[%s2277_s24 + $0x38] sm:$0xff]   ;;  %v1955_v23 = vmov 0.0   ;;  %v1625_v24 = vld [vmem:[%s2277_s24 + $0x30] sm:$0xff]   ;;  %vm1956_vm1 = vmmov 0   ;;  %v1626_v25 = vld [vmem:[%s2277_s24 + $0x28] sm:$0xff]   ;;  %vm841_vm2 = vcmask 130048  }
 0x1a4   : > { %1416 = vmatprep.subr.bf16.mxu0 %v1955_v23  ;;  %1436 = vmatprep.subr.bf16.mxu1 %v1955_v23  ;;  %v727_v27 = vld [vmem:[%s485_s3] sm:$0xf]  ;;  %v1628_v29 = vld [vmem:[%s2277_s24 + $0x18] sm:$0xff]   ;;  %s2462_s7 = sld [smem:[#allocation25_spill]]  ;;  %v1629_v30 = vld [vmem:[%s2277_s24 + $0x10] sm:$0xff]  }
 0x1a5   : > { %1417 = vmatpush3.bf16.msra.mxu0 %v1624_v22  ;;  %1438 = vmatprep.mubr.msk.bf16.mxu1 %vm1956_vm1, %v1955_v23  ;;  %v1627_v28 = vld [vmem:[%s2277_s24 + $0x20] sm:$0xff]   ;;  %v1631_v31 = vld [vmem:[%s2277_s24 + $0x8] sm:$0xff]   ;;  %v888_v53 = vld [vmem:[#allocation4] sm:$0x1] }
 0x1a6   : > { %1418 = vmatprep.subr.bf16.mxu0 %v1955_v23  ;;  %1432 = vmatprep.mubr.msk.bf16.mxu0 %vm1956_vm1, %v1955_v23  ;;  %v1632_v32 = vld [vmem:[%s2277_s24] sm:$0xff]   ;;  %v730_v33 = vld [vmem:[%s494_s30] sm:$0xf]  ;;  %v897_v56 = vld [vmem:[#allocation5] sm:$0x1] }
 0x1a9   : > { %1419 = vmatpush3.bf16.msra.mxu0 %v1625_v24  ;;  %v1630_v26 = vld [vmem:[#allocation3] sm:$0xff]  }
 0x1aa   : > { %1420 = vmatprep.subr.bf16.mxu0 %v1955_v23  ;;  %1437 = vmatpush3.bf16.msra.mxu1 %v1630_v26  ;;  %s1339_s3 = sshll.u32 %s2462_s7, 3  ;;  %p1340_p11 = scmp.ne.s32.totalorder %s2462_s7, 1 }
 0x1ab   : > { %s886_s18 = scalar_lea.vmem [#allocation2], %s1339_s3 }
 0x1ad   : > { %1421 = vmatpush3.bf16.msra.mxu0 %v1626_v25  ;;  %1439 = vmatmul.mubr.msk.bf16.vlgmr.msra.gmra.mxu1 %vm841_vm2, %v727_v27 }
 0x1ae   : > { %1422 = vmatprep.subr.bf16.mxu0 %v1955_v23 }
 0x1b1   : > { %1423 = vmatpush3.bf16.msra.mxu0 %v1627_v28 }
 0x1b2   : > { %1424 = vmatprep.subr.bf16.mxu0 %v1955_v23 }
 0x1b5   : > { %1425 = vmatpush3.bf16.msra.mxu0 %v1628_v29 }
 0x1b6   : > { %1426 = vmatprep.subr.bf16.mxu0 %v1955_v23 }
 0x1b9   : > { %1427 = vmatpush3.bf16.msra.mxu0 %v1629_v30 }
 0x1ba   : > { %1428 = vmatprep.subr.bf16.mxu0 %v1955_v23 }
 0x1bd   : > { %1429 = vmatpush3.bf16.msra.mxu0 %v1631_v31 }
 0x1be   : > { %1430 = vmatprep.subr.bf16.mxu0 %v1955_v23 }
 0x1c1   : > { %1431 = vmatpush3.bf16.msra.mxu0 %v1632_v32 }
 0x1c4   : > { %1433 = vmatmul.mubr.bf16.vlgmr.msra.gmra.mxu0 %v730_v33 }
 0x26d   : > { %v879_v34 = vpop.f32.mrf.mxu1 }
 0x26f   : > { %v1440_v35 = vpop.f32.mrf.mxu1 }
 0x271   : > { %v882_v36 = vpop.f32.mrf.mxu1 }
 0x273   : > { %v1441_v37 = vpop.f32.mrf.mxu1 }
 0x284   : > { %v829_v38 = vpop.f32.mrf.mxu0 }
 0x285   : > { %v880_v39 = vadd.f32 %v879_v34, %v829_v38 }
 0x286   : > { %v1434_v40 = vpop.f32.mrf.mxu0 }
 0x287   : > { %887 = vst [vmem:[%s886_s18] sm:$0xff] %v880_v39  ;;  %v889_v41 = vrot.slane %v880_v39, 4  ;;  %v898_v42 = vmul.f32 %v880_v39, %v880_v39 }
 0x288   : > { %v832_v43 = vpop.f32.mrf.mxu0 }
 0x289   : > { %v890_v44 = vadd.f32 %v889_v41, %v880_v39  ;;  %v899_v45 = vrot.slane %v898_v42, 4 }
 0x28a   : > { %v1435_v46 = vpop.f32.mrf.mxu0 }
 0x28b   : > { %v891_v47 = vrot.slane %v890_v44, 2  ;;  %v900_v48 = vadd.f32 %v899_v45, %v898_v42 }
 0x28d   : > { %v892_v49 = vadd.f32 %v891_v47, %v890_v44  ;;  %v901_v50 = vrot.slane %v900_v48, 2 }
 0x28f   : > { %v893_v51 = vrot.slane %v892_v49, 1  ;;  %v902_v52 = vadd.f32 %v901_v50, %v900_v48 }
 0x291   : > { %v894_v54 = vadd.f32 %v893_v51, %v892_v49  ;;  %v903_v55 = vrot.slane %v902_v52, 1 }
 0x293   : > { %v895_v57 = vadd.f32 %v894_v54, %v888_v53  ;;  %v904_v58 = vadd.f32 %v903_v55, %v902_v52  ;;  %910 = sbr.rel (%p1340_p11) target bundleno = 1112 (0x458), region = 100 }
 0x295   : > { %896 = vst [vmem:[#allocation4] sm:$0x1] %v895_v57  ;;  %v905_v59 = vadd.f32 %v904_v58, %v897_v56 }
 0x297   : > { %906 = vst [vmem:[#allocation5] sm:$0x1] %v905_v59 }
 0x298   : > { %v928_v4 = vlaneseq  ;;  %v918_v6 = vld [vmem:[%s583_s11] sm:$0x1]  ;;  %v926_v12 = vld [vmem:[#allocation2 + $0x8] sm:$0xff]  ;;  %s2465_s11 = sld [smem:[#allocation26_spill]] }
 0x299   : > { %v922_v10 = vld [vmem:[%s586_s9] sm:$0x1] }
 0x29a   : > { %v929_v5 = vshrl.u32 %v928_v4, 7  ;;  %v925_v11 = vld [vmem:[#allocation2] sm:$0xff] }
 0x29c   : > { %v911_v60 = vld [vmem:[#allocation4] sm:$0x1]  ;;  %v930_v7 = vsub.s32 0, %v929_v5 }
 0x29d   : > { %v912_v62 = vmul.f32 0.0625, %v911_v60 }
 0x29e   : > { %v913_v61 = vld [vmem:[#allocation5] sm:$0x1]  ;;  %p1341_p1 = scmp.ne.s32.totalorder %s2465_s11, 2 }
 0x29f   : > { %v914_v63 = vmul.f32 0.0625, %v913_v61  ;;  %v915_v0 = vmul.f32 %v912_v62, %v912_v62  ;;  %s2466_s12 = sld [smem:[#allocation31_spill]] (!%p1341_p1) }
 0x2a0   : > { %s2467_s4 = sld [smem:[#allocation38_spill]] (!%p1341_p1) }
 0x2a1   : > { %v916_v1 = vsub.f32 %v914_v63, %v915_v0 }
 0x2a3   : > { %v917_v2 = vmax.f32 %v916_v1, 0.0 }
 0x2a5   : > { %v919_v3 = vadd.f32 1e-05, %v917_v2 }
 0x2a7   : > { %1633 = vrsqrt.f32 %v919_v3 }
 0x2b4   : > { %v1634_v8 = vpop.eup %1633 }
 0x2b5   : > { %v921_v9 = vmul.f32 %v1634_v8, %v918_v6 }
 0x2b7   : > { %v923_v13 = vmul.f32 %v921_v9, %v912_v62  ;;  %v931_v14 = vrot.slane %v921_v9, %v930_v7 }
 0x2b9   : > { %v924_v15 = vsub.f32 %v922_v10, %v923_v13  ;;  %v933_v16 = vmul.f32 %v931_v14, %v925_v11  ;;  %v934_v17 = vmul.f32 %v931_v14, %v926_v12 }
 0x2bb   : > { %v939_v18 = vrot.slane %v924_v15, %v930_v7 }
 0x2bd   : > { %v941_v19 = vadd.f32 %v939_v18, %v933_v16  ;;  %v942_v20 = vadd.f32 %v939_v18, %v934_v17  ;;  %950 = sbr.rel (%p1341_p1) target bundleno = 1112 (0x458), region = 104 }
 0x2bf   : > { %v943_v21 = vmax.f32 %v941_v19, 0.0  ;;  %v944_v22 = vmax.f32 %v942_v20, 0.0 }
 0x2c1   : > { %945 = vst [vmem:[#allocation2] sm:$0xff] %v943_v21  ;;  %946 = vst [vmem:[#allocation2 + $0x8] sm:$0xff] %v944_v22 }
 0x2c2   : > { %v1957_v25 = vmov 0.0   ;;  %vm1958_vm3 = vmmov 0   ;;  %v1635_v27 = vld [vmem:[#allocation15 + $0x38] sm:$0xff]   ;;  %v951_v28 = vld [vmem:[%s2466_s12] sm:$0xf]  ;;  %v1636_v29 = vld [vmem:[#allocation15 + $0x30] sm:$0xff]  }
 0x2c3   : > { %1442 = vmatprep.subr.bf16.mxu0 %v1957_v25  ;;  %1444 = vmatprep.mubr.msk.bf16.mxu0 %vm1958_vm3, %v1957_v25  ;;  %v1637_v30 = vld [vmem:[#allocation15 + $0x28] sm:$0xff]   ;;  %v1638_v31 = vld [vmem:[#allocation15 + $0x20] sm:$0xff]   ;;  %v1639_v32 = vld [vmem:[#allocation15 + $0x18] sm:$0xff]  }
 0x2c4   : > { %1448 = vmatprep.subr.bf16.mxu1 %v1957_v25  ;;  %1464 = vmatprep.mubr.msk.bf16.mxu1 %vm1958_vm3, %v1957_v25  ;;  %v1640_v33 = vld [vmem:[#allocation15 + $0x10] sm:$0xff]   ;;  %v1641_v34 = vld [vmem:[#allocation15 + $0x8] sm:$0xff]   ;;  %v1642_v35 = vld [vmem:[#allocation15] sm:$0xff]  }
 0x2c5   : > { %1449 = vmatpush3.bf16.msra.mxu1 %v1635_v27  ;;  %v1343_v41 = vld [vmem:[%s2467_s4] ss:$0 sm:$0xff] }
 0x2c6   : > { %1450 = vmatprep.subr.bf16.mxu1 %v1957_v25 }
 0x2c8   : > { %v952_v23 = vld [vmem:[#allocation2] sm:$0xff]  ;;  %v953_v24 = vld [vmem:[#allocation2 + $0x8] sm:$0xff] }
 0x2c9   : > { %v954_v26 = vpack.c.bf16 %v953_v24, %v952_v23  ;;  %1451 = vmatpush3.bf16.msra.mxu1 %v1636_v29 }
 0x2ca   : > { %1452 = vmatprep.subr.bf16.mxu1 %v1957_v25 }
 0x2cb   : > { %1443 = vmatpush3.bf16.msra.mxu0 %v954_v26 }
 0x2cd   : > { %1453 = vmatpush3.bf16.msra.mxu1 %v1637_v30 }
 0x2ce   : > { %1445 = vmatmul.mubr.msk.bf16.vlgmr.msra.gmra.mxu0 %vm841_vm2, %v951_v28  ;;  %1454 = vmatprep.subr.bf16.mxu1 %v1957_v25 }
 0x2d1   : > { %1455 = vmatpush3.bf16.msra.mxu1 %v1638_v31 }
 0x2d2   : > { %1456 = vmatprep.subr.bf16.mxu1 %v1957_v25 }
 0x2d5   : > { %1457 = vmatpush3.bf16.msra.mxu1 %v1639_v32 }
 0x2d6   : > { %1458 = vmatprep.subr.bf16.mxu1 %v1957_v25 }
 0x2d9   : > { %1459 = vmatpush3.bf16.msra.mxu1 %v1640_v33 }
 0x2da   : > { %1460 = vmatprep.subr.bf16.mxu1 %v1957_v25 }
 0x2dd   : > { %1461 = vmatpush3.bf16.msra.mxu1 %v1641_v34 }
 0x2de   : > { %1462 = vmatprep.subr.bf16.mxu1 %v1957_v25 }
 0x2e1   : > { %1463 = vmatpush3.bf16.msra.mxu1 %v1642_v35 }
 0x38e   : > { %v992_v36 = vpop.f32.mrf.mxu0 }
 0x38f   : > { %v998_v37 = vpack.c.bf16 %v992_v36, %v992_v36 }
 0x390   : > { %v1446_v38 = vpop.f32.mrf.mxu0 }
 0x391   : > { %1465 = vmatmul.mubr.bf16.vlgmr.msra.gmra.mxu1 %v998_v37 }
 0x392   : > { %v995_v39 = vpop.f32.mrf.mxu0 }
 0x394   : > { %v1447_v40 = vpop.f32.mrf.mxu0 }
 0x451   : > { %v1104_v42 = vpop.f32.mrf.mxu1 }
 0x452   : > { %v1105_v43 = vadd.f32 %v1343_v41, %v1104_v42 }
 0x453   : > { %v1466_v44 = vpop.f32.mrf.mxu1 }
 0x454   : > { %1110 = vst [vmem:[#allocation17] sm:$0xff] %v1105_v43 }
 0x455   : > { %v1107_v45 = vpop.f32.mrf.mxu1 }
 0x457   : > { %v1467_v46 = vpop.f32.mrf.mxu1 }
 0x458 PF: > { %p1513_p7 = scmp.eq.s32.totalorder %s2074_s28, 5  ;;  %s1959_s10 = smov [#allocation17]  }
 0x459   : > { %s1118_s29 = sshll.u32 %s1959_s10, 4  ;;  %s1119_s29 = int_to_ptr.vmem [resolvable:$true] %s1118_s29 }
 0x45a   : > { %s1807_s14 = scalar_lea.vmem %s1119_s29, 128  ;;  %p1814_p8 = scmp.lt.s32.totalorder %s1119_s29, %s1119_s29 }
 0x45b   : > { %p1808_p2 = scmp.ne.s32.totalorder %s1119_s29, %s1807_s14  ;;  %p1815_p5 = scmp.lt.s32.totalorder %s1807_s14, %s1807_s14 }
 0x45d   : > { %p1809_p0 = pnand %p1808_p2, %p1513_p7  ;;  %p1816_p12 = por %p1815_p5, %p1814_p8 }
 0x45f   : > { %p1810_p3 = pneg %p1809_p0 }
 0x461   : > { %p1817_p13 = pnand %p1816_p12, %p1810_p3 }
 0x463   : > { %1820 = shalt.err (!%p1817_p13)
}
 0x464   : > { %s2468_s3 = sld [smem:[#allocation39_spill]] }
 0x46a   : > { %1485 = dma.vmem_to_hbm [thread:$0]  (%p1513_p7), %s1119_s29, 128, %s2468_s3, [#allocation8]  }
 0x46b   : > { %1896 = dma.done.wait (%p1513_p7), [#allocation8], 128  }
 0x46c   : > { %1898 = vsyncadd (%p1513_p7), [#allocation8], 4294967168 }
 0x46d PF: > { %s32_s27 = sadd.s32 1, %s1941_s27   ;;  %s2469_s17 = sld [smem:[#allocation24_spill]] }
 0x46e   : > { %p29_p6 = scmp.ge.s32.totalorder %s32_s27, 8   ;;  %s2470_s30 = sld [smem:[#allocation28_spill]] }
 0x46f   : > { %s2471_s16 = sld [smem:[#allocation29_spill]]  ;;  %s2472_s18 = smov %s1909_s19 }
 0x470   : > { %s2473_s19 = smov %s2200_s2  ;;  %s2474_s20 = smov %s1917_s21 }
 0x471   : > { %s2475_s21 = smov %s1921_s22  ;;  %s2476_s22 = smov %s2192_s13 }
 0x472   : > { %s2477_s23 = smov %s1933_s25  ;;  %s2478_s24 = smov %s1937_s26 }
 0x473   :  { %31 = sbr.rel (!%p29_p6) target bundleno = 24 (0x18), region = 172 }
 0x474   : > { %s2479_s25 = smov %s2470_s30 }
 0x475   : > { %s2480_s26 = smov %s2471_s16 }
 0x478   :  { %1131 = vsyncpa [#allocation7], 1 }
 0x479   :  { %1133 = vsyncpa [#allocation7 + $0x1], 1 }
 0x47a   :  { %1134 = vsyncpa [#allocation10], 1 }
 0x47b   :  { %1136 = vsyncpa [#allocation10 + $0x1], 1 }
 0x47c   :  { %1137 = vsyncpa [#allocation13], 1 }
 0x47d   :  { %1139 = vsyncpa [#allocation13 + $0x1], 1 }
 0x47e   :  { %1140 = vsyncpa [#allocation16], 1 }
 0x47f   :  { %1141 = vsyncpa [#allocation8], 1 }
 0x480   :  { %1143 = vsyncpa [#allocation8 + $0x1], 1 }

</bundles_post_ra>
